<compile_context>
chip_gen: v6e
topology: v6e:2x2x1
jax: 0.10.0
libtpu: 0.0.40
codegen_flags: <defaults>
</compile_context>

<pallas_src>
import jax
import jax.numpy as jnp
from jax.experimental import pallas as pl
from jax.experimental.pallas import tpu as pltpu

P_DROP = 0.5  # torch.nn.functional.dropout default: p=0.5, training=True


def _attn_dropout_kernel(x1_ref, x2_ref, mask_ref, o_ref):
    a = x1_ref[...]        # (BB, S, K)  -- kept in input dtype for the MXU
    b = x2_ref[...]        # (BB, M, K)
    mask = mask_ref[...]   # (BB, S, M)  f32, values in {0, 1/(1-p)}

    # qk = x1 @ x2^T  -> (BB, S, M); contract the K (lane) axis of both.
    qk = jnp.einsum(
        "bsk,bmk->bsm", a, b, preferred_element_type=jnp.float32
    )

    # Numerically-stable softmax over the last (M) axis.
    m = jnp.max(qk, axis=-1, keepdims=True)
    p = jnp.exp(qk - m)
    inv = 1.0 / jnp.sum(p, axis=-1, keepdims=True)

    # Dropout: the 1/(1-p) scale is already folded into `mask`, so this is a
    # single fused normalize+mask multiply chain.
    dropped = p * inv * mask

    # out = dropped @ x2 -> (BB, S, K)
    out = jnp.einsum(
        "bsm,bmk->bsk",
        dropped.astype(b.dtype),
        b,
        preferred_element_type=jnp.float32,
    )
    o_ref[...] = out.astype(o_ref.dtype)


def sdpa_dropout(x1, x2, key, p_drop=P_DROP):
    B, S, K = x1.shape
    B2, M, K2 = x2.shape
    assert B == B2 and K == K2, "x1 (B,S,K) and x2 (B,M,K) must share B and K"

    # TODO(synk): dropout RNG stream differs from torch's (mask drawn with
    # jax.random in the wrapper since the TPU stateful PRNG primitives do not
    # lower under interpret mode); keep-probability and 1/(1-p) scaling match.
    keep = jax.random.bernoulli(key, 1.0 - p_drop, (B, S, M))
    drop_mask = keep.astype(jnp.float32) * (1.0 / (1.0 - p_drop))

    # Whole batch per grid step: at these sizes everything (<1 MiB) fits VMEM
    # on every TPU generation, and one grid step amortizes per-step overhead.
    BB = B
    grid = (B // BB,)

    return pl.pallas_call(
        _attn_dropout_kernel,
        out_shape=jax.ShapeDtypeStruct((B, S, K), x1.dtype),
        grid_spec=pltpu.PrefetchScalarGridSpec(
            num_scalar_prefetch=0,
            grid=grid,
            in_specs=[
                pl.BlockSpec((BB, S, K), lambda i: (i, 0, 0)),
                pl.BlockSpec((BB, M, K), lambda i: (i, 0, 0)),
                pl.BlockSpec((BB, S, M), lambda i: (i, 0, 0)),
            ],
            out_specs=pl.BlockSpec((BB, S, K), lambda i: (i, 0, 0)),
        ),
        compiler_params=pltpu.CompilerParams(
            # Independent batch chunks: shardable across v7x's two TensorCores.
            dimension_semantics=("parallel",),
        ),
    )(x1, x2, drop_mask)


if __name__ == "__main__":
    key = jax.random.PRNGKey(0)
    k1, k2, k_drop = jax.random.split(key, 3)

    # Small, TPU-tile-friendly shapes (M and K multiples of 128 -> lane-dense).
    B, S, M, K = 2, 16, 128, 128
    x1 = jax.random.normal(k1, (B, S, K), dtype=jnp.float32)
    x2 = jax.random.normal(k2, (B, M, K), dtype=jnp.float32)

    out = sdpa_dropout(x1, x2, k_drop)
    jax.block_until_ready(out)

    assert out.shape == (B, S, K)
    assert out.dtype == jnp.float32
    assert bool(jnp.all(jnp.isfinite(out)))
    print("KERNEL_OK")
</pallas_src>

<mosaic_0001>
module attributes {stable_mosaic.version = 11 : i64} {
  func.func @_attn_dropout_kernel(%arg0: i32, %arg1: memref<2x16x128xf32, #tpu.memory_space<vmem>>, %arg2: memref<2x128x128xf32, #tpu.memory_space<vmem>>, %arg3: memref<2x16x128xf32, #tpu.memory_space<vmem>>, %arg4: memref<2x16x128xf32, #tpu.memory_space<vmem>>) attributes {dimension_semantics = [#tpu.dimension_semantics<parallel>], iteration_bounds = array<i64: 1>, scalar_prefetch = 0 : i64, scratch_operands = 0 : i64, tpu.core_type = #tpu.core_type<tc>, window_params = [{transform_indices = @transform_0, window_bounds = array<i64: 2, 16, 128>}, {transform_indices = @transform_1, window_bounds = array<i64: 2, 128, 128>}, {transform_indices = @transform_2, window_bounds = array<i64: 2, 16, 128>}, {transform_indices = @transform_3, window_bounds = array<i64: 2, 16, 128>}]} {
    %c0 = arith.constant 0 : index
    %c0_0 = arith.constant 0 : index
    %c0_1 = arith.constant 0 : index
    %0 = vector.load %arg1[%c0, %c0_0, %c0_1] : memref<2x16x128xf32, #tpu.memory_space<vmem>>, vector<2x16x128xf32>
    %c0_2 = arith.constant 0 : index
    %c0_3 = arith.constant 0 : index
    %c0_4 = arith.constant 0 : index
    %1 = vector.load %arg2[%c0_2, %c0_3, %c0_4] : memref<2x128x128xf32, #tpu.memory_space<vmem>>, vector<2x128x128xf32>
    %c0_5 = arith.constant 0 : index
    %c0_6 = arith.constant 0 : index
    %c0_7 = arith.constant 0 : index
    %2 = vector.load %arg3[%c0_5, %c0_6, %c0_7] : memref<2x16x128xf32, #tpu.memory_space<vmem>>, vector<2x16x128xf32>
    "tpu.trace_start"() <{level = 10 : i32, message = "bsk,bmk->bsm"}> : () -> ()
    %cst = arith.constant dense<0.000000e+00> : vector<2x16x128xf32>
    %3 = tpu.matmul %0, %1, %cst {dimension_numbers = #tpu.dot_dimension_numbers<[2], [2], [1], [1], [0, 0, 0, 1, 1, 1], [0], [0]>} : vector<2x16x128xf32>, vector<2x128x128xf32>, vector<2x16x128xf32> -> vector<2x16x128xf32>
    "tpu.trace_stop"() : () -> ()
    %cst_8 = arith.constant dense<0xFF800000> : vector<2x16xf32>
    %4 = vector.multi_reduction <maximumf>, %3, %cst_8 [2] : vector<2x16x128xf32> to vector<2x16xf32>
    %5 = vector.shape_cast %4 : vector<2x16xf32> to vector<2x16x1xf32>
    %6 = vector.broadcast %5 : vector<2x16x1xf32> to vector<2x16x128xf32>
    %7 = arith.subf %3, %6 : vector<2x16x128xf32>
    %8 = math.exp %7 : vector<2x16x128xf32>
    %cst_9 = arith.constant dense<0.000000e+00> : vector<2x16xf32>
    %9 = vector.multi_reduction <add>, %8, %cst_9 [2] : vector<2x16x128xf32> to vector<2x16xf32>
    %10 = vector.shape_cast %9 : vector<2x16xf32> to vector<2x16x1xf32>
    %cst_10 = arith.constant 1.000000e+00 : f32
    %11 = vector.broadcast %cst_10 : f32 to vector<2x16x1xf32>
    %12 = arith.divf %11, %10 : vector<2x16x1xf32>
    %13 = vector.broadcast %12 : vector<2x16x1xf32> to vector<2x16x128xf32>
    %14 = arith.mulf %8, %13 : vector<2x16x128xf32>
    %15 = arith.mulf %14, %2 : vector<2x16x128xf32>
    "tpu.trace_start"() <{level = 10 : i32, message = "bsm,bmk->bsk"}> : () -> ()
    %cst_11 = arith.constant dense<0.000000e+00> : vector<2x16x128xf32>
    %16 = tpu.matmul %15, %1, %cst_11 {dimension_numbers = #tpu.dot_dimension_numbers<[2], [1], [1], [2], [0, 0, 0, 1, 1, 2], [0], [0]>} : vector<2x16x128xf32>, vector<2x128x128xf32>, vector<2x16x128xf32> -> vector<2x16x128xf32>
    "tpu.trace_stop"() : () -> ()
    %c0_12 = arith.constant 0 : index
    %c0_13 = arith.constant 0 : index
    %c0_14 = arith.constant 0 : index
    %17 = vector.load %arg4[%c0_12, %c0_13, %c0_14] : memref<2x16x128xf32, #tpu.memory_space<vmem>>, vector<2x16x128xf32>
    tpu.vector_store %arg4[%c0_12, %c0_13, %c0_14], %16 {strides = array<i32>} : memref<2x16x128xf32, #tpu.memory_space<vmem>>, vector<2x16x128xf32>,
    return
  }
  func.func @transform_0(%arg0: i32) -> (i32, i32, i32) {
    %c0_i32 = arith.constant 0 : i32
    %c0_i32_0 = arith.constant 0 : i32
    %c0_i32_1 = arith.constant 0 : i32
    return %arg0, %c0_i32, %c0_i32_0 : i32, i32, i32
  }
  func.func @transform_1(%arg0: i32) -> (i32, i32, i32) {
    %c0_i32 = arith.constant 0 : i32
    %c0_i32_0 = arith.constant 0 : i32
    %c0_i32_1 = arith.constant 0 : i32
    return %arg0, %c0_i32, %c0_i32_0 : i32, i32, i32
  }
  func.func @transform_2(%arg0: i32) -> (i32, i32, i32) {
    %c0_i32 = arith.constant 0 : i32
    %c0_i32_0 = arith.constant 0 : i32
    %c0_i32_1 = arith.constant 0 : i32
    return %arg0, %c0_i32, %c0_i32_0 : i32, i32, i32
  }
  func.func @transform_3(%arg0: i32) -> (i32, i32, i32) {
    %c0_i32 = arith.constant 0 : i32
    %c0_i32_0 = arith.constant 0 : i32
    %c0_i32_1 = arith.constant 0 : i32
    return %arg0, %c0_i32, %c0_i32_0 : i32, i32, i32
  }
}

</mosaic_0001>

<bundles_post_ra>
// kernel: tpu_custom_call.1
= control target key start
LH: loop header
LB: loop body
LE: loop exit
PB: predicated region body
PF: predicated region fallthrough
CT: control target
= control target key end

     0   :  { %8 = vsyncpa [#allocation3], 0  ;;  %s1024_s0 = inlined_call_operand.hbm [shape: f32[2,16,128], index: 0, kind: input, shape index: {}]   ;;  %s1025_s1 = inlined_call_operand.hbm [shape: f32[2,128,128], index: 1, kind: input, shape index: {}]   ;;  %s1026_s2 = inlined_call_operand.hbm [shape: f32[2,16,128], index: 2, kind: input, shape index: {}]   ;;  %s1027_s3 = inlined_call_operand.hbm [shape: f32[2,16,128], index: 3, kind: output, shape index: {}]  }
   0x1   :  { %9 = vsyncpa [#allocation6], 0 }
   0x2   :  { %10 = vsyncpa [#allocation4], 0  ;;  %s782_s12 = smov [#allocation5]   ;;  %s783_s14 = smov [#allocation2]  }
   0x3   :  { %s28_s13 = sshll.u32 %s782_s12, 4  ;;  %s16_s15 = sshll.u32 %s783_s14, 4  ;;  %s29_s13 = int_to_ptr.vmem [resolvable:$true] %s28_s13  ;;  %s17_s15 = int_to_ptr.vmem [resolvable:$true] %s16_s15 }
   0x4   :  { %s704_s16 = scalar_lea.vmem %s29_s13, 4096  ;;  %p709_p1 = scmp.lt.s32.totalorder %s29_s13, %s29_s13 }
   0x5   :  { %p705_p0 = scmp.ne.s32.totalorder %s29_s13, %s704_s16  ;;  %p710_p2 = scmp.lt.s32.totalorder %s704_s16, %s704_s16 }
   0x7   :  { %p711_p3 = por %p710_p2, %p709_p1 }
   0x9   :  { %p712_p4 = pnand %p711_p3, %p705_p0 }
   0xb   :  { %715 = shalt.err (!%p712_p4)
}
   0xc   :  { %s784_s17 = smov 128   ;;  %s785_s18 = smov 8  }
   0xd   :  { %34 = dma.hbm_to_vmem [thread:$0]  %s1025_s1, 4096, %s29_s13, [#allocation6], %s784_s17, %s784_s17, %s785_s18  }
   0xe   :  { %s724_s21 = scalar_lea.vmem %s17_s15, 512  ;;  %p729_p6 = scmp.lt.s32.totalorder %s17_s15, %s17_s15 }
   0xf   :  { %p725_p5 = scmp.ne.s32.totalorder %s17_s15, %s724_s21  ;;  %p730_p7 = scmp.lt.s32.totalorder %s724_s21, %s724_s21 }
  0x11   :  { %p731_p8 = por %p730_p7, %p729_p6 }
  0x13   :  { %p732_p9 = pnand %p731_p8, %p725_p5 }
  0x15   :  { %735 = shalt.err (!%p732_p9)
}
  0x16   :  { %22 = dma.hbm_to_vmem [thread:$0]  %s1024_s0, 512, %s17_s15, [#allocation3], %s784_s17, %s784_s17, %s785_s18  }
  0x17   :  { %s786_s24 = smov [#allocation7]  }
  0x18   :  { %s40_s25 = sshll.u32 %s786_s24, 4  ;;  %s41_s25 = int_to_ptr.vmem [resolvable:$true] %s40_s25 }
  0x19   :  { %s744_s26 = scalar_lea.vmem %s41_s25, 512  ;;  %p749_p11 = scmp.lt.s32.totalorder %s41_s25, %s41_s25 }
  0x1a   :  { %p745_p10 = scmp.ne.s32.totalorder %s41_s25, %s744_s26  ;;  %p750_p12 = scmp.lt.s32.totalorder %s744_s26, %s744_s26 }
  0x1c   :  { %p751_p13 = por %p750_p12, %p749_p11 }
  0x1e   :  { %p752_p0 = pnand %p751_p13, %p745_p10 }
  0x20   :  { %755 = shalt.err (!%p752_p0)
}
  0x21   :  { %46 = dma.hbm_to_vmem [thread:$0]  %s1026_s2, 512, %s41_s25, [#allocation6], %s784_s17, %s784_s17, %s785_s18  }
  0x22   :  { %776 = dma.done.wait [#allocation3], 512  }
  0x23   :  { %777 = vsyncadd [#allocation3], 4294966784 }
  0x24   :  { %778 = dma.done.wait [#allocation6], 4608  }
  0x25   :  { %779 = vsyncadd [#allocation6], 4294962688  ;;  %v826_v0 = vld [vmem:[#allocation5 + $0x78] sm:$0xff]  ;;  %v830_v2 = vld [vmem:[#allocation5 + $0x70] sm:$0xff]  ;;  %s787_s0 = smov [#allocation8]  }
  0x26   :  { %v828_v1 = vld [vmem:[#allocation5 + $0xf8] sm:$0xff]  ;;  %534 = vmatprep.subr.mxu0 %v826_v0  ;;  %v834_v3 = vld [vmem:[#allocation5 + $0xf0] sm:$0xff]  ;;  %v840_v4 = vld [vmem:[#allocation5 + $0x68] sm:$0xff]  ;;  %s449_s2 = sshll.u32 %s787_s0, 4  ;;  %s450_s2 = int_to_ptr.vmem [resolvable:$true] %s449_s2 }
  0x27   :  { %569 = vmatprep.subr.mxu1 %v828_v1  ;;  %535 = vmatpush3.xpose.msra.mxu0 %v826_v0  ;;  %v842_v5 = vld [vmem:[#allocation5 + $0xe8] sm:$0xff]  ;;  %v848_v6 = vld [vmem:[#allocation5 + $0x60] sm:$0xff]  ;;  %v58_v9 = vld [vmem:[#allocation2 + $0x10] sm:$0xff]  ;;  %s756_s28 = scalar_lea.vmem %s450_s2, 512  ;;  %p761_p2 = scmp.lt.s32.totalorder %s450_s2, %s450_s2 }
  0x28   :  { %570 = vmatpush3.xpose.msra.mxu1 %v828_v1  ;;  %536 = vmatprep.subr.mxu0 %v830_v2  ;;  %v850_v7 = vld [vmem:[#allocation5 + $0xe0] sm:$0xff]  ;;  %v856_v10 = vld [vmem:[#allocation5 + $0x58] sm:$0xff]  ;;  %v864_v12 = vld [vmem:[#allocation5 + $0x50] sm:$0xff]  ;;  %p757_p1 = scmp.ne.s32.totalorder %s450_s2, %s756_s28  ;;  %p762_p3 = scmp.lt.s32.totalorder %s756_s28, %s756_s28 }
  0x29   :  { %571 = vmatprep.subr.mxu1 %v834_v3  ;;  %v56_v8 = vld [vmem:[#allocation2] sm:$0xff]  ;;  %v858_v11 = vld [vmem:[#allocation5 + $0xd8] sm:$0xff]  ;;  %601 = vmatprep.mubr.f32.mxu1 %v58_v9  ;;  %v866_v13 = vld [vmem:[#allocation5 + $0xd0] sm:$0xff] }
  0x2a   :  { %566 = vmatprep.mubr.f32.mxu0 %v56_v8  ;;  %v872_v14 = vld [vmem:[#allocation5 + $0x48] sm:$0xff]  ;;  %v880_v16 = vld [vmem:[#allocation5 + $0x40] sm:$0xff]  ;;  %v888_v18 = vld [vmem:[#allocation5 + $0x38] sm:$0xff]  ;;  %p763_p4 = por %p762_p3, %p761_p2 }
  0x2b   :  { %537 = vmatpush3.xpose.msra.mxu0 %v830_v2  ;;  %v874_v15 = vld [vmem:[#allocation5 + $0xc8] sm:$0xff]  ;;  %v882_v17 = vld [vmem:[#allocation5 + $0xc0] sm:$0xff]  ;;  %v890_v19 = vld [vmem:[#allocation5 + $0xb8] sm:$0xff] }
  0x2c   :  { %572 = vmatpush3.xpose.msra.mxu1 %v834_v3  ;;  %538 = vmatprep.subr.mxu0 %v840_v4  ;;  %v896_v20 = vld [vmem:[#allocation5 + $0x30] sm:$0xff]  ;;  %v904_v22 = vld [vmem:[#allocation5 + $0x28] sm:$0xff]  ;;  %v912_v24 = vld [vmem:[#allocation5 + $0x20] sm:$0xff]  ;;  %p764_p5 = pnand %p763_p4, %p757_p1 }
  0x2d   :  { %573 = vmatprep.subr.mxu1 %v842_v5  ;;  %v898_v21 = vld [vmem:[#allocation5 + $0xb0] sm:$0xff]  ;;  %v906_v23 = vld [vmem:[#allocation5 + $0xa8] sm:$0xff]  ;;  %v914_v25 = vld [vmem:[#allocation5 + $0xa0] sm:$0xff] }
  0x2e   :  { %v920_v26 = vld [vmem:[#allocation5 + $0x18] sm:$0xff]  ;;  %v928_v28 = vld [vmem:[#allocation5 + $0x10] sm:$0xff]  ;;  %v936_v30 = vld [vmem:[#allocation5 + $0x8] sm:$0xff] }
  0x2f   :  { %539 = vmatpush3.xpose.msra.mxu0 %v840_v4  ;;  %v922_v27 = vld [vmem:[#allocation5 + $0x98] sm:$0xff]  ;;  %v930_v29 = vld [vmem:[#allocation5 + $0x90] sm:$0xff]  ;;  %v938_v31 = vld [vmem:[#allocation5 + $0x88] sm:$0xff] }
  0x30   :  { %574 = vmatpush3.xpose.msra.mxu1 %v842_v5  ;;  %540 = vmatprep.subr.mxu0 %v848_v6  ;;  %v944_v32 = vld [vmem:[#allocation5] sm:$0xff]  ;;  %v57_v34 = vld [vmem:[#allocation2 + $0x8] sm:$0xff]  ;;  %v59_v35 = vld [vmem:[#allocation2 + $0x18] sm:$0xff] }
  0x31   :  { %575 = vmatprep.subr.mxu1 %v850_v7  ;;  %v946_v33 = vld [vmem:[#allocation5 + $0x80] sm:$0xff]  ;;  %v95_v9 = vld [vmem:[#allocation7 + $0x18] sm:$0xff] }
  0x32   :  { %v92_v61 = vld [vmem:[#allocation7] sm:$0xff] }
  0x33   :  { %541 = vmatpush3.xpose.msra.mxu0 %v848_v6 }
  0x34   :  { %576 = vmatpush3.xpose.msra.mxu1 %v850_v7  ;;  %542 = vmatprep.subr.mxu0 %v856_v10 }
  0x35   :  { %577 = vmatprep.subr.mxu1 %v858_v11 }
  0x37   :  { %543 = vmatpush3.xpose.msra.mxu0 %v856_v10 }
  0x38   :  { %578 = vmatpush3.xpose.msra.mxu1 %v858_v11  ;;  %544 = vmatprep.subr.mxu0 %v864_v12 }
  0x39   :  { %579 = vmatprep.subr.mxu1 %v866_v13 }
  0x3b   :  { %545 = vmatpush3.xpose.msra.mxu0 %v864_v12 }
  0x3c   :  { %580 = vmatpush3.xpose.msra.mxu1 %v866_v13  ;;  %546 = vmatprep.subr.mxu0 %v872_v14 }
  0x3d   :  { %581 = vmatprep.subr.mxu1 %v874_v15 }
  0x3f   :  { %547 = vmatpush3.xpose.msra.mxu0 %v872_v14 }
  0x40   :  { %582 = vmatpush3.xpose.msra.mxu1 %v874_v15  ;;  %548 = vmatprep.subr.mxu0 %v880_v16 }
  0x41   :  { %583 = vmatprep.subr.mxu1 %v882_v17 }
  0x43   :  { %549 = vmatpush3.xpose.msra.mxu0 %v880_v16 }
  0x44   :  { %584 = vmatpush3.xpose.msra.mxu1 %v882_v17  ;;  %550 = vmatprep.subr.mxu0 %v888_v18 }
  0x45   :  { %585 = vmatprep.subr.mxu1 %v890_v19 }
  0x47   :  { %551 = vmatpush3.xpose.msra.mxu0 %v888_v18 }
  0x48   :  { %586 = vmatpush3.xpose.msra.mxu1 %v890_v19  ;;  %552 = vmatprep.subr.mxu0 %v896_v20 }
  0x49   :  { %587 = vmatprep.subr.mxu1 %v898_v21 }
  0x4b   :  { %553 = vmatpush3.xpose.msra.mxu0 %v896_v20 }
  0x4c   :  { %588 = vmatpush3.xpose.msra.mxu1 %v898_v21  ;;  %554 = vmatprep.subr.mxu0 %v904_v22 }
  0x4d   :  { %589 = vmatprep.subr.mxu1 %v906_v23 }
  0x4f   :  { %555 = vmatpush3.xpose.msra.mxu0 %v904_v22 }
  0x50   :  { %590 = vmatpush3.xpose.msra.mxu1 %v906_v23  ;;  %556 = vmatprep.subr.mxu0 %v912_v24 }
  0x51   :  { %591 = vmatprep.subr.mxu1 %v914_v25 }
  0x53   :  { %557 = vmatpush3.xpose.msra.mxu0 %v912_v24 }
  0x54   :  { %592 = vmatpush3.xpose.msra.mxu1 %v914_v25  ;;  %558 = vmatprep.subr.mxu0 %v920_v26 }
  0x55   :  { %593 = vmatprep.subr.mxu1 %v922_v27 }
  0x57   :  { %559 = vmatpush3.xpose.msra.mxu0 %v920_v26 }
  0x58   :  { %594 = vmatpush3.xpose.msra.mxu1 %v922_v27  ;;  %560 = vmatprep.subr.mxu0 %v928_v28 }
  0x59   :  { %595 = vmatprep.subr.mxu1 %v930_v29 }
  0x5b   :  { %561 = vmatpush3.xpose.msra.mxu0 %v928_v28 }
  0x5c   :  { %596 = vmatpush3.xpose.msra.mxu1 %v930_v29  ;;  %562 = vmatprep.subr.mxu0 %v936_v30 }
  0x5d   :  { %597 = vmatprep.subr.mxu1 %v938_v31 }
  0x5f   :  { %563 = vmatpush3.xpose.msra.mxu0 %v936_v30 }
  0x60   :  { %598 = vmatpush3.xpose.msra.mxu1 %v938_v31  ;;  %564 = vmatprep.subr.mxu0 %v944_v32 }
  0x61   :  { %599 = vmatprep.subr.mxu1 %v946_v33 }
  0x63   :  { %565 = vmatpush3.xpose.msra.mxu0 %v944_v32 }
  0x64   :  { %600 = vmatpush3.xpose.msra.mxu1 %v946_v33  ;;  %604 = vmatprep.subr.mxu0 %v826_v0 }
  0x65   :  { %639 = vmatprep.subr.mxu1 %v828_v1 }
  0x66   :  { %567 = vmatmul.mubr.f32.vlgmr.msra.gmra.mxu0 %v57_v34 }
  0x67   :  { %602 = vmatmul.mubr.f32.vlgmr.msra.gmra.mxu1 %v59_v35  ;;  %605 = vmatpush3.msra.mxu0 %v826_v0 }
  0x68   :  { %640 = vmatpush3.msra.mxu1 %v828_v1  ;;  %606 = vmatprep.subr.mxu0 %v830_v2  ;;  %v94_v1 = vld [vmem:[#allocation7 + $0x10] sm:$0xff] }
  0x69   :  { %641 = vmatprep.subr.mxu1 %v834_v3  ;;  %607 = vmatpush3.msra.mxu0 %v830_v2 }
  0x6a   :  { %642 = vmatpush3.msra.mxu1 %v834_v3  ;;  %608 = vmatprep.subr.mxu0 %v840_v4  ;;  %v93_v3 = vld [vmem:[#allocation7 + $0x8] sm:$0xff] }
  0x6b   :  { %643 = vmatprep.subr.mxu1 %v842_v5  ;;  %609 = vmatpush3.msra.mxu0 %v840_v4 }
  0x6c   :  { %644 = vmatpush3.msra.mxu1 %v842_v5  ;;  %610 = vmatprep.subr.mxu0 %v848_v6 }
  0x6d   :  { %645 = vmatprep.subr.mxu1 %v850_v7  ;;  %611 = vmatpush3.msra.mxu0 %v848_v6 }
  0x6e   :  { %646 = vmatpush3.msra.mxu1 %v850_v7  ;;  %612 = vmatprep.subr.mxu0 %v856_v10 }
  0x6f   :  { %647 = vmatprep.subr.mxu1 %v858_v11  ;;  %613 = vmatpush3.msra.mxu0 %v856_v10 }
  0x70   :  { %648 = vmatpush3.msra.mxu1 %v858_v11  ;;  %614 = vmatprep.subr.mxu0 %v864_v12 }
  0x71   :  { %649 = vmatprep.subr.mxu1 %v866_v13  ;;  %615 = vmatpush3.msra.mxu0 %v864_v12 }
  0x72   :  { %650 = vmatpush3.msra.mxu1 %v866_v13  ;;  %616 = vmatprep.subr.mxu0 %v872_v14 }
  0x73   :  { %651 = vmatprep.subr.mxu1 %v874_v15  ;;  %617 = vmatpush3.msra.mxu0 %v872_v14 }
  0x74   :  { %652 = vmatpush3.msra.mxu1 %v874_v15  ;;  %618 = vmatprep.subr.mxu0 %v880_v16 }
  0x75   :  { %653 = vmatprep.subr.mxu1 %v882_v17  ;;  %619 = vmatpush3.msra.mxu0 %v880_v16 }
  0x76   :  { %654 = vmatpush3.msra.mxu1 %v882_v17  ;;  %620 = vmatprep.subr.mxu0 %v888_v18 }
  0x77   :  { %655 = vmatprep.subr.mxu1 %v890_v19  ;;  %621 = vmatpush3.msra.mxu0 %v888_v18 }
  0x78   :  { %656 = vmatpush3.msra.mxu1 %v890_v19  ;;  %622 = vmatprep.subr.mxu0 %v896_v20 }
  0x79   :  { %657 = vmatprep.subr.mxu1 %v898_v21  ;;  %623 = vmatpush3.msra.mxu0 %v896_v20 }
  0x7a   :  { %658 = vmatpush3.msra.mxu1 %v898_v21  ;;  %624 = vmatprep.subr.mxu0 %v904_v22 }
  0x7b   :  { %659 = vmatprep.subr.mxu1 %v906_v23  ;;  %625 = vmatpush3.msra.mxu0 %v904_v22 }
  0x7c   :  { %660 = vmatpush3.msra.mxu1 %v906_v23  ;;  %626 = vmatprep.subr.mxu0 %v912_v24 }
  0x7d   :  { %661 = vmatprep.subr.mxu1 %v914_v25  ;;  %627 = vmatpush3.msra.mxu0 %v912_v24 }
  0x7e   :  { %662 = vmatpush3.msra.mxu1 %v914_v25  ;;  %628 = vmatprep.subr.mxu0 %v920_v26 }
  0x7f   :  { %663 = vmatprep.subr.mxu1 %v922_v27  ;;  %629 = vmatpush3.msra.mxu0 %v920_v26 }
  0x80   :  { %664 = vmatpush3.msra.mxu1 %v922_v27  ;;  %630 = vmatprep.subr.mxu0 %v928_v28 }
  0x81   :  { %665 = vmatprep.subr.mxu1 %v930_v29  ;;  %631 = vmatpush3.msra.mxu0 %v928_v28 }
  0x82   :  { %666 = vmatpush3.msra.mxu1 %v930_v29  ;;  %632 = vmatprep.subr.mxu0 %v936_v30 }
  0x83   :  { %667 = vmatprep.subr.mxu1 %v938_v31  ;;  %633 = vmatpush3.msra.mxu0 %v936_v30 }
  0x84   :  { %668 = vmatpush3.msra.mxu1 %v938_v31  ;;  %634 = vmatprep.subr.mxu0 %v944_v32 }
  0x85   :  { %669 = vmatprep.subr.mxu1 %v946_v33  ;;  %635 = vmatpush3.msra.mxu0 %v944_v32 }
  0x86   :  { %670 = vmatpush3.msra.mxu1 %v946_v33 }
 0x126   :  { %v568_v36 = vpop.f32.mrf.mxu0 }
 0x127   :  { %248 = vmax.xlane.f32.xlu1 %v568_v36  ;;  %v603_v38 = vpop.f32.mrf.mxu1 }
 0x128   :  { %v162_v37 = vpop.f32.mrf.mxu0 }
 0x129   :  { %246 = vmax.xlane.f32.xlu0 %v162_v37  ;;  %v237_v39 = vpop.f32.mrf.mxu1 }
 0x12b   :  { %252 = vmax.xlane.f32.xlu1 %v603_v38 }
 0x12d   :  { %250 = vmax.xlane.f32.xlu0 %v237_v39 }
 0x1b0   :  { %v249_v40 = vpop.xlane.xlu1 %248 }
 0x1b1   :  { %v255_v41 = vsub.f32 %v568_v36, %v249_v40 }
 0x1b2   :  { %v247_v42 = vpop.xlane.xlu0 %246 }
 0x1b3   :  { %v254_v43 = vsub.f32 %v162_v37, %v247_v42  ;;  %v260_v46 = vmul.f32 1.442695, %v255_v41 }
 0x1b4   :  { %v253_v44 = vpop.xlane.xlu1 %252 }
 0x1b5   :  { %v258_v45 = vmul.f32 1.442695, %v254_v43  ;;  %v257_v48 = vsub.f32 %v603_v38, %v253_v44 }
 0x1b6   :  { %v251_v47 = vpop.xlane.xlu0 %250 }
 0x1b7   :  { %680 = vpow2.f32 %v258_v45  ;;  %v256_v49 = vsub.f32 %v237_v39, %v251_v47  ;;  %v264_v51 = vmul.f32 1.442695, %v257_v48 }
 0x1b8   :  { %682 = vpow2.f32 %v260_v46 }
 0x1b9   :  { %v262_v50 = vmul.f32 1.442695, %v256_v49 }
 0x1bb   :  { %684 = vpow2.f32 %v262_v50 }
 0x1bc   :  { %686 = vpow2.f32 %v264_v51 }
 0x1c4   :  { %v681_v52 = vpop.eup %680 }
 0x1c5   :  { %266 = vadd.xlane.f32.xlu0 %v681_v52  ;;  %v683_v53 = vpop.eup %682 }
 0x1c8   :  { %v685_v54 = vpop.eup %684 }
 0x1c9   :  { %268 = vadd.xlane.f32.xlu0 %v683_v53  ;;  %270 = vadd.xlane.f32.xlu1 %v685_v54  ;;  %v687_v55 = vpop.eup %686 }
 0x1cd   :  { %272 = vadd.xlane.f32.xlu1 %v687_v55 }
 0x24e   :  { %v267_v56 = vpop.xlane.xlu0 %266 }
 0x24f   :  { %688 = vrcp.f32 %v267_v56 }
 0x252   :  { %v271_v57 = vpop.xlane.xlu1 %270  ;;  %v269_v58 = vpop.xlane.xlu0 %268 }
 0x253   :  { %690 = vrcp.f32 %v271_v57 }
 0x254   :  { %692 = vrcp.f32 %v269_v58 }
 0x256   :  { %v273_v59 = vpop.xlane.xlu1 %272 }
 0x257   :  { %694 = vrcp.f32 %v273_v59 }
 0x25c   :  { %v689_v60 = vpop.eup %688 }
 0x25d   :  { %v282_v62 = vmul.f32 %v689_v60, %v681_v52 }
 0x25f   :  { %v286_v63 = vmul.f32 %v282_v62, %v92_v61 }
 0x260   :  { %v691_v0 = vpop.eup %690 }
 0x261   :  { %v693_v2 = vpop.eup %692  ;;  %636 = vmatprep.mubr.f32.mxu0 %v286_v63  ;;  %v284_v4 = vmul.f32 %v691_v0, %v685_v54 }
 0x262   :  { %v283_v5 = vmul.f32 %v693_v2, %v683_v53 }
 0x263   :  { %v288_v6 = vmul.f32 %v284_v4, %v94_v1 }
 0x264   :  { %v695_v7 = vpop.eup %694  ;;  %v287_v8 = vmul.f32 %v283_v5, %v93_v3 }
 0x265   :  { %671 = vmatprep.mubr.f32.mxu1 %v288_v6  ;;  %v285_v10 = vmul.f32 %v695_v7, %v687_v55 }
 0x266   :  { %637 = vmatmul.mubr.f32.vlgmr.msra.gmra.mxu0 %v287_v8 }
 0x267   :  { %v289_v11 = vmul.f32 %v285_v10, %v95_v9 }
 0x269   :  { %672 = vmatmul.mubr.f32.vlgmr.msra.gmra.mxu1 %v289_v11 }
 0x326   :  { %v638_v12 = vpop.f32.mrf.mxu0 }
 0x327   :  { %441 = vst [vmem:[#allocation8 + $0x8] sm:$0xff] %v638_v12 }
 0x328   :  { %v356_v13 = vpop.f32.mrf.mxu0 }
 0x329   :  { %440 = vst [vmem:[#allocation8] sm:$0xff] %v356_v13  ;;  %v673_v14 = vpop.f32.mrf.mxu1 }
 0x32a   :  { %443 = vst [vmem:[#allocation8 + $0x18] sm:$0xff] %v673_v14 }
 0x32b   :  { %v431_v15 = vpop.f32.mrf.mxu1 }
 0x32c   :  { %442 = vst [vmem:[#allocation8 + $0x10] sm:$0xff] %v431_v15 }
 0x32d   :  { %767 = shalt.err (!%p764_p5)
}
 0x32e   :  { %455 = dma.vmem_to_hbm [thread:$0]  %s450_s2, 512, %s1027_s3, [#allocation4], %s784_s17, %s784_s17, %s785_s18  }
 0x32f   :  { %780 = dma.done.wait [#allocation4], 512  }
 0x330   :  { %781 = vsyncadd [#allocation4], 4294966784 }
 0x331   :  { %459 = vsyncpa [#allocation3], 1 }
 0x332   :  { %460 = vsyncpa [#allocation6], 1 }
 0x333   :  { %461 = vsyncpa [#allocation4], 1 }

</bundles_post_ra>
